<compile_context>
chip_gen: v7x
topology: tpu7x:2x2x1
jax: 0.10.0
libtpu: 0.0.40
codegen_flags: <defaults>
</compile_context>

<pallas_src>
import functools

import jax
import jax.numpy as jnp
from jax import lax
from jax.experimental import pallas as pl
from jax.experimental.pallas import tpu as pltpu

LANES = 128


def _align8(x):
    return (x + 7) // 8 * 8


def _lrelu(x, slope=0.2):
    return jnp.where(x > 0, x, slope * x)


# --------------------------------------------------------------------------- #
# Host-side parameter packing (pre-fusion + one flat lane-major buffer).
# --------------------------------------------------------------------------- #
def pack_params(p):
    """Fuse + pack all parameters into a single (R, 128) f32 buffer.

    Returns (buffer, offsets) where offsets[name] = (row_offset, rows, cols).
    Row offsets are 8-aligned so in-kernel static slices stay sublane-aligned;
    unused lanes are zero (the w_out / b_out rows are therefore already padded
    for the lane-dense output store).
    """
    tensors = {
        "w_bag": jnp.concatenate([p["w_asc"], p["w_i1"]], axis=1),   # fused first layer
        "b_bag": jnp.concatenate([p["b_asc"], p["b_i1"]], axis=1),
        "w_e": p["w_e"], "b_e": p["b_e"],
        "w_b1": p["w_b1"], "b_b1": p["b_b1"],
        "w_b2": p["w_b2"], "b_b2": p["b_b2"],
        "w_i2": p["w_i2"], "b_i2": p["b_i2"],
        "w_sa": p["w_sa"], "b_sa": p["b_sa"],
        "w_se": jnp.concatenate([p["w_se1"], p["w_se2"]], axis=1),   # fused SA scores
        "b_se": p["b_se"],
        "w_out": p["w_out"], "b_out": p["b_out"],
    }
    offsets = {}
    row = 0
    for name, t in tensors.items():
        assert t.ndim == 2 and t.shape[1] <= LANES, (name, t.shape)
        offsets[name] = (row, t.shape[0], t.shape[1])
        row = _align8(row + t.shape[0])
    buf = jnp.zeros((row, LANES), jnp.float32)
    for name, t in tensors.items():
        off, r, c = offsets[name]
        buf = buf.at[off:off + r, :c].set(t.astype(jnp.float32))
    return buf, offsets


# --------------------------------------------------------------------------- #
# Kernel
# --------------------------------------------------------------------------- #
def _make_kernel(offsets, BB, N, agg_out, self_out):
    def kernel(bag_ref, p_ref, y_ref):
        f32 = jnp.float32

        def get(name):
            off, r, c = offsets[name]
            return p_ref[off:off + r, :c]

        def get_full(name):                     # full 128 lanes (zero-padded)
            off, r, _ = offsets[name]
            return p_ref[off:off + r, :]

        # ---- hoisted parameter loads (once per large step, amortized over BB bags)
        w_bag, b_bag = get("w_bag"), get("b_bag")
        w_e, b_e = get("w_e"), get("b_e")
        w_b1, b_b1 = get("w_b1"), get("b_b1")
        w_b2, b_b2 = get("w_b2"), get("b_b2")
        w_i2, b_i2 = get("w_i2"), get("b_i2")
        w_sa, b_sa = get("w_sa"), get("b_sa")
        w_se, b_se = get("w_se"), get("b_se")
        w_out, b_out = get_full("w_out"), get_full("b_out")

        # (N, BB, agg_in) instance-major block -> flatten bags into the matmul M dim.
        agg_in = bag_ref.shape[2]
        flat = bag_ref[...].astype(f32).reshape(N * BB, agg_in)          # (N*BB, agg_in)

        # ---- fused first layer: [AttentionInBag.ascend_dim | ins_info.Linear1]
        hu = _lrelu(jnp.dot(flat, w_bag, preferred_element_type=f32) + b_bag)
        h1 = hu[:, :agg_out]                                             # (N*BB, agg_out)
        u = hu[:, agg_out:]                                              # (N*BB, agg_in//2)

        # ---- AttentionInBag: per-bag softmax over the N instances (leading axis)
        e = jnp.dot(h1, w_e, preferred_element_type=f32) + b_e           # (N*BB, 1)
        e3 = e.reshape(N, BB, 1)
        m = jnp.max(e3, axis=0)                                          # (BB, 1)
        z = jnp.exp(e3 - m)
        alpha = z * (1.0 / jnp.sum(z, axis=0))                           # exact division
        h1_3 = h1.reshape(N, BB, agg_out)
        bag_att = jnp.sum(alpha * h1_3, axis=0)                          # (BB, agg_out)

        # ---- rest of bag_info Sequential
        t = _lrelu(bag_att)
        t = _lrelu(jnp.dot(t, w_b1, preferred_element_type=f32) + b_b1)
        bag_info = jnp.dot(t, w_b2, preferred_element_type=f32) + b_b2   # (BB, self_in)

        # ---- ins_info Sequential tail
        ins_info = jnp.dot(u, w_i2, preferred_element_type=f32) + b_i2   # (N*BB, self_in)

        # ---- SelfAttention over [bag_info ; ins_info]: no VMEM round-trip,
        # center / instance rows share w_sa as two dots kept in vregs.
        h_c = _lrelu(jnp.dot(bag_info, w_sa, preferred_element_type=f32) + b_sa)   # (BB, self_out)
        h_i = _lrelu(jnp.dot(ins_info, w_sa, preferred_element_type=f32) + b_sa)   # (N*BB, self_out)

        # score for row r of a bag:  e_r = center.w_se1 + h_r.w_se2 + b_se
        ec = jnp.dot(h_c, w_se, preferred_element_type=f32)              # (BB, 2) = [c, s_center]
        c = ec[:, 0:1]                                                   # (BB, 1)
        e2_c = c + ec[:, 1:2] + b_se                                     # center row score
        s_i = jnp.dot(h_i, w_se[:, 1:2], preferred_element_type=f32) + b_se        # (N*BB, 1)
        e2_i = s_i.reshape(N, BB, 1) + c                                 # instance row scores

        m2 = jnp.maximum(jnp.max(e2_i, axis=0), e2_c)                    # (BB, 1)
        z_i = jnp.exp(e2_i - m2)                                         # (N, BB, 1)
        z_c = jnp.exp(e2_c - m2)                                         # (BB, 1)
        inv2 = 1.0 / (jnp.sum(z_i, axis=0) + z_c)                        # exact division
        h_i3 = h_i.reshape(N, BB, self_out)
        agg = (z_c * h_c + jnp.sum(z_i * h_i3, axis=0)) * inv2           # (BB, self_out)

        # ---- final classifier; lane-dense 128-wide (zero-padded) store
        x = _lrelu(agg)
        y_ref[...] = jnp.dot(x, w_out, preferred_element_type=f32) + b_out   # (BB, 128)

    return kernel


# --------------------------------------------------------------------------- #
# Wrapper
# --------------------------------------------------------------------------- #
def net_forward(bags, packed, offsets, BB=None):
    """bags: (B, N, agg_in) f32.  Returns (B, n_class) f32."""
    B, N, agg_in = bags.shape
    R, L = packed.shape
    agg_out = offsets["w_e"][1]      # rows of w_e  == agg_out_len
    self_out = offsets["w_sa"][2]    # cols of w_sa == self_out_len
    n_class = offsets["w_out"][2]

    if BB is None:
        # Two grid steps when possible (one block per v7x TensorCore); the
        # (BB, 128) output block needs BB % 8 == 0, otherwise fall back to BB=B.
        BB = B // 2 if (B % 2 == 0 and (B // 2) % 8 == 0) else B
    assert B % BB == 0, (B, BB)
    grid = B // BB

    # Instance-major layout: per-bag reductions become leading-axis reductions.
    bags_t = jnp.transpose(bags, (1, 0, 2))                 # (N, B, agg_in)

    kernel = _make_kernel(offsets, BB, N, agg_out, self_out)
    out = pl.pallas_call(
        kernel,
        out_shape=jax.ShapeDtypeStruct((B, LANES), jnp.float32),
        grid_spec=pltpu.PrefetchScalarGridSpec(
            num_scalar_prefetch=0,
            grid=(grid,),
            in_specs=[
                # BB bags (all N instances) per grid step.
                pl.BlockSpec((N, BB, agg_in), lambda g: (0, g, 0)),
                # whole packed-parameter buffer, constant block index:
                # DMA'd once, resident in VMEM across the grid.
                pl.BlockSpec((R, L), lambda g: (0, 0)),
            ],
            out_specs=pl.BlockSpec((BB, LANES), lambda g: (g, 0)),
        ),
        compiler_params=pltpu.CompilerParams(
            dimension_semantics=("parallel",)),
    )(bags_t, packed)
    return out[:, :n_class]


# --------------------------------------------------------------------------- #
# Pure-JAX reference (mirrors the PyTorch forward, explicit concats)
# --------------------------------------------------------------------------- #
def net_reference(bag, p):
    mm = functools.partial(jnp.dot, precision=lax.Precision.HIGHEST)
    lrelu = lambda x: jnp.where(x > 0, x, 0.2 * x)
    h1 = lrelu(mm(bag, p["w_asc"]) + p["b_asc"])
    e = (mm(h1, p["w_e"]) + p["b_e"]).reshape(1, -1)
    alpha = jax.nn.softmax(e, axis=1)
    bag_att = mm(alpha, h1)
    t = lrelu(bag_att)
    t = lrelu(mm(t, p["w_b1"]) + p["b_b1"])
    bag_info = mm(t, p["w_b2"]) + p["b_b2"]
    u = lrelu(mm(bag, p["w_i1"]) + p["b_i1"])
    ins_info = mm(u, p["w_i2"]) + p["b_i2"]
    total = jnp.concatenate([bag_info, ins_info], axis=0)
    h = lrelu(mm(total, p["w_sa"]) + p["b_sa"])
    center = jnp.tile(h[0:1], (h.shape[0], 1))
    sn = jnp.concatenate([center, h], axis=1)
    w_se = jnp.concatenate([p["w_se1"], p["w_se2"]], axis=0)
    e2 = (mm(sn, w_se) + p["b_se"]).reshape(1, -1)
    alpha2 = jax.nn.softmax(e2, axis=1)
    agg = mm(alpha2, h)
    x = lrelu(agg)
    return (mm(x, p["w_out"]) + p["b_out"])[0]


# --------------------------------------------------------------------------- #
# Parameter init (PyTorch nn.Linear-style uniform)
# --------------------------------------------------------------------------- #
def init_params(key, agg_in, agg_out, self_in, self_out, n_class):
    def linear(k, fan_in, fan_out):
        kw, kb = jax.random.split(k)
        lim = 1.0 / jnp.sqrt(fan_in)
        w = jax.random.uniform(kw, (fan_in, fan_out), jnp.float32, -lim, lim)
        b = jax.random.uniform(kb, (1, fan_out), jnp.float32, -lim, lim)
        return w, b

    ks = jax.random.split(key, 10)
    p = {}
    p["w_asc"], p["b_asc"] = linear(ks[0], agg_in, agg_out)          # AttentionInBag.ascend_dim
    p["w_e"], p["b_e"] = linear(ks[1], agg_out, 1)                   # AttentionInBag.compute_e
    p["w_b1"], p["b_b1"] = linear(ks[2], agg_out, agg_out // 2)      # bag_info Linear 1
    p["w_b2"], p["b_b2"] = linear(ks[3], agg_out // 2, self_in)      # bag_info Linear 2
    p["w_i1"], p["b_i1"] = linear(ks[4], agg_in, agg_in // 2)        # ins_info Linear 1
    p["w_i2"], p["b_i2"] = linear(ks[5], agg_in // 2, self_in)       # ins_info Linear 2
    p["w_sa"], p["b_sa"] = linear(ks[6], self_in, self_out)          # SelfAttention.ascend_dim
    w_se, p["b_se"] = linear(ks[7], 2 * self_out, 1)                 # SelfAttention.compute_e
    p["w_se1"], p["w_se2"] = w_se[:self_out], w_se[self_out:]
    p["w_out"], p["b_out"] = linear(ks[8], self_out, n_class)        # agg_bag_ins_linear
    return p


if __name__ == "__main__":
    B = 16                # bags per pallas_call -> BB = 8, grid = (2,)
    N = 8                 # instances per bag (exact, no padding -> no masking)
    agg_in_len = 32
    agg_out_len = 16
    self_in_len = 16
    self_out_len = 16
    n_class = 4

    key = jax.random.PRNGKey(0)
    k_bag, k_par = jax.random.split(key)
    bags = jax.random.normal(k_bag, (B, N, agg_in_len), jnp.float32)
    params = init_params(k_par, agg_in_len, agg_out_len, self_in_len, self_out_len, n_class)
    packed, offsets = pack_params(params)

    y = net_forward(bags, packed, offsets)
    y = jax.block_until_ready(y)

    y_ref = jax.vmap(functools.partial(net_reference, p=params))(bags)
    assert y.shape == (B, n_class), y.shape
    # Exact softmax division + f32 MXU accumulation: only associativity-level
    # differences vs. the highest-precision JAX reference remain.
    assert jnp.allclose(y, y_ref, atol=1e-3, rtol=1e-3), (y, y_ref)

    print("KERNEL_OK")
</pallas_src>

<mosaic_0001>
module attributes {stable_mosaic.version = 11 : i64} {
  func.func @kernel(%arg0: i32, %arg1: memref<8x8x32xf32, #tpu.memory_space<vmem>>, %arg2: memref<200x128xf32, #tpu.memory_space<vmem>>, %arg3: memref<8x128xf32, #tpu.memory_space<vmem>>) attributes {dimension_semantics = [#tpu.dimension_semantics<parallel>], iteration_bounds = array<i64: 2>, scalar_prefetch = 0 : i64, scratch_operands = 0 : i64, tpu.core_type = #tpu.core_type<tc>, window_params = [{transform_indices = @transform_0, window_bounds = array<i64: 8, 8, 32>}, {pipeline_mode = #tpu.pipeline_mode<synchronous>, transform_indices = @transform_1, window_bounds = array<i64: 200, 128>}, {transform_indices = @transform_2, window_bounds = array<i64: 8, 128>}]} {
    %c0 = arith.constant 0 : index
    %c0_0 = arith.constant 0 : index
    %0 = vector.load %arg2[%c0, %c0_0] : memref<200x128xf32, #tpu.memory_space<vmem>>, vector<32x32xf32>
    %c32 = arith.constant 32 : index
    %c0_1 = arith.constant 0 : index
    %1 = vector.load %arg2[%c32, %c0_1] : memref<200x128xf32, #tpu.memory_space<vmem>>, vector<1x32xf32>
    %c40 = arith.constant 40 : index
    %c0_2 = arith.constant 0 : index
    %2 = vector.load %arg2[%c40, %c0_2] : memref<200x128xf32, #tpu.memory_space<vmem>>, vector<16x1xf32>
    %c56 = arith.constant 56 : index
    %c0_3 = arith.constant 0 : index
    %3 = vector.load %arg2[%c56, %c0_3] : memref<200x128xf32, #tpu.memory_space<vmem>>, vector<1x1xf32>
    %c64 = arith.constant 64 : index
    %c0_4 = arith.constant 0 : index
    %4 = vector.load %arg2[%c64, %c0_4] : memref<200x128xf32, #tpu.memory_space<vmem>>, vector<16x8xf32>
    %c80 = arith.constant 80 : index
    %c0_5 = arith.constant 0 : index
    %5 = vector.load %arg2[%c80, %c0_5] : memref<200x128xf32, #tpu.memory_space<vmem>>, vector<1x8xf32>
    %c88 = arith.constant 88 : index
    %c0_6 = arith.constant 0 : index
    %6 = vector.load %arg2[%c88, %c0_6] : memref<200x128xf32, #tpu.memory_space<vmem>>, vector<8x16xf32>
    %c96 = arith.constant 96 : index
    %c0_7 = arith.constant 0 : index
    %7 = vector.load %arg2[%c96, %c0_7] : memref<200x128xf32, #tpu.memory_space<vmem>>, vector<1x16xf32>
    %c104 = arith.constant 104 : index
    %c0_8 = arith.constant 0 : index
    %8 = vector.load %arg2[%c104, %c0_8] : memref<200x128xf32, #tpu.memory_space<vmem>>, vector<16x16xf32>
    %c120 = arith.constant 120 : index
    %c0_9 = arith.constant 0 : index
    %9 = vector.load %arg2[%c120, %c0_9] : memref<200x128xf32, #tpu.memory_space<vmem>>, vector<1x16xf32>
    %c128 = arith.constant 128 : index
    %c0_10 = arith.constant 0 : index
    %10 = vector.load %arg2[%c128, %c0_10] : memref<200x128xf32, #tpu.memory_space<vmem>>, vector<16x16xf32>
    %c144 = arith.constant 144 : index
    %c0_11 = arith.constant 0 : index
    %11 = vector.load %arg2[%c144, %c0_11] : memref<200x128xf32, #tpu.memory_space<vmem>>, vector<1x16xf32>
    %c152 = arith.constant 152 : index
    %c0_12 = arith.constant 0 : index
    %12 = vector.load %arg2[%c152, %c0_12] : memref<200x128xf32, #tpu.memory_space<vmem>>, vector<16x2xf32>
    %c168 = arith.constant 168 : index
    %c0_13 = arith.constant 0 : index
    %13 = vector.load %arg2[%c168, %c0_13] : memref<200x128xf32, #tpu.memory_space<vmem>>, vector<1x1xf32>
    %c176 = arith.constant 176 : index
    %c0_14 = arith.constant 0 : index
    %14 = vector.load %arg2[%c176, %c0_14] : memref<200x128xf32, #tpu.memory_space<vmem>>, vector<16x128xf32>
    %c192 = arith.constant 192 : index
    %c0_15 = arith.constant 0 : index
    %15 = vector.load %arg2[%c192, %c0_15] : memref<200x128xf32, #tpu.memory_space<vmem>>, vector<1x128xf32>
    %c0_16 = arith.constant 0 : index
    %c0_17 = arith.constant 0 : index
    %c0_18 = arith.constant 0 : index
    %16 = vector.load %arg1[%c0_16, %c0_17, %c0_18] : memref<8x8x32xf32, #tpu.memory_space<vmem>>, vector<8x8x32xf32>
    %17 = vector.shape_cast %16 : vector<8x8x32xf32> to vector<64x32xf32>
    %cst = arith.constant dense<0.000000e+00> : vector<64x32xf32>
    %18 = tpu.matmul %17, %0, %cst {dimension_numbers = #tpu.dot_dimension_numbers<[1], [0], [0], [1], [0, 0, 1, 1], [], []>} : vector<64x32xf32>, vector<32x32xf32>, vector<64x32xf32> -> vector<64x32xf32>
    %19 = vector.broadcast %1 : vector<1x32xf32> to vector<64x32xf32>
    %20 = arith.addf %18, %19 : vector<64x32xf32>
    %cst_19 = arith.constant 0.000000e+00 : f32
    %21 = vector.broadcast %cst_19 : f32 to vector<64x32xf32>
    %22 = arith.cmpf ogt, %20, %21 : vector<64x32xf32>
    %cst_20 = arith.constant 2.000000e-01 : f32
    %23 = vector.broadcast %cst_20 : f32 to vector<64x32xf32>
    %24 = arith.mulf %23, %20 : vector<64x32xf32>
    %25 = arith.select %22, %20, %24 : vector<64x32xi1>, vector<64x32xf32>
    %26 = vector.extract_strided_slice %25 {offsets = [0, 0], sizes = [64, 16], strides = [1, 1]} : vector<64x32xf32> to vector<64x16xf32>
    %27 = vector.extract_strided_slice %25 {offsets = [0, 16], sizes = [64, 16], strides = [1, 1]} : vector<64x32xf32> to vector<64x16xf32>
    %cst_21 = arith.constant dense<0.000000e+00> : vector<64x1xf32>
    %28 = tpu.matmul %26, %2, %cst_21 {dimension_numbers = #tpu.dot_dimension_numbers<[1], [0], [0], [1], [0, 0, 1, 1], [], []>} : vector<64x16xf32>, vector<16x1xf32>, vector<64x1xf32> -> vector<64x1xf32>
    %29 = vector.broadcast %3 : vector<1x1xf32> to vector<64x1xf32>
    %30 = arith.addf %28, %29 : vector<64x1xf32>
    %31 = vector.shape_cast %30 : vector<64x1xf32> to vector<8x8x1xf32>
    %cst_22 = arith.constant dense<0xFF800000> : vector<8x1xf32>
    %32 = vector.multi_reduction <maximumf>, %31, %cst_22 [0] : vector<8x8x1xf32> to vector<8x1xf32>
    %33 = vector.shape_cast %32 : vector<8x1xf32> to vector<1x8x1xf32>
    %34 = vector.broadcast %33 : vector<1x8x1xf32> to vector<8x8x1xf32>
    %35 = arith.subf %31, %34 : vector<8x8x1xf32>
    %36 = math.exp %35 : vector<8x8x1xf32>
    %cst_23 = arith.constant dense<0.000000e+00> : vector<8x1xf32>
    %37 = vector.multi_reduction <add>, %36, %cst_23 [0] : vector<8x8x1xf32> to vector<8x1xf32>
    %cst_24 = arith.constant 1.000000e+00 : f32
    %38 = vector.broadcast %cst_24 : f32 to vector<8x1xf32>
    %39 = arith.divf %38, %37 : vector<8x1xf32>
    %40 = vector.shape_cast %39 : vector<8x1xf32> to vector<1x8x1xf32>
    %41 = vector.broadcast %40 : vector<1x8x1xf32> to vector<8x8x1xf32>
    %42 = arith.mulf %36, %41 : vector<8x8x1xf32>
    %43 = vector.shape_cast %26 : vector<64x16xf32> to vector<8x8x16xf32>
    %44 = vector.broadcast %42 : vector<8x8x1xf32> to vector<8x8x16xf32>
    %45 = arith.mulf %44, %43 : vector<8x8x16xf32>
    %cst_25 = arith.constant dense<0.000000e+00> : vector<8x16xf32>
    %46 = vector.multi_reduction <add>, %45, %cst_25 [0] : vector<8x8x16xf32> to vector<8x16xf32>
    %cst_26 = arith.constant 0.000000e+00 : f32
    %47 = vector.broadcast %cst_26 : f32 to vector<8x16xf32>
    %48 = arith.cmpf ogt, %46, %47 : vector<8x16xf32>
    %cst_27 = arith.constant 2.000000e-01 : f32
    %49 = vector.broadcast %cst_27 : f32 to vector<8x16xf32>
    %50 = arith.mulf %49, %46 : vector<8x16xf32>
    %51 = arith.select %48, %46, %50 : vector<8x16xi1>, vector<8x16xf32>
    %cst_28 = arith.constant dense<0.000000e+00> : vector<8x8xf32>
    %52 = tpu.matmul %51, %4, %cst_28 {dimension_numbers = #tpu.dot_dimension_numbers<[1], [0], [0], [1], [0, 0, 1, 1], [], []>} : vector<8x16xf32>, vector<16x8xf32>, vector<8x8xf32> -> vector<8x8xf32>
    %53 = vector.broadcast %5 : vector<1x8xf32> to vector<8x8xf32>
    %54 = arith.addf %52, %53 : vector<8x8xf32>
    %cst_29 = arith.constant 0.000000e+00 : f32
    %55 = vector.broadcast %cst_29 : f32 to vector<8x8xf32>
    %56 = arith.cmpf ogt, %54, %55 : vector<8x8xf32>
    %cst_30 = arith.constant 2.000000e-01 : f32
    %57 = vector.broadcast %cst_30 : f32 to vector<8x8xf32>
    %58 = arith.mulf %57, %54 : vector<8x8xf32>
    %59 = arith.select %56, %54, %58 : vector<8x8xi1>, vector<8x8xf32>
    %cst_31 = arith.constant dense<0.000000e+00> : vector<8x16xf32>
    %60 = tpu.matmul %59, %6, %cst_31 {dimension_numbers = #tpu.dot_dimension_numbers<[1], [0], [0], [1], [0, 0, 1, 1], [], []>} : vector<8x8xf32>, vector<8x16xf32>, vector<8x16xf32> -> vector<8x16xf32>
    %61 = vector.broadcast %7 : vector<1x16xf32> to vector<8x16xf32>
    %62 = arith.addf %60, %61 : vector<8x16xf32>
    %cst_32 = arith.constant dense<0.000000e+00> : vector<64x16xf32>
    %63 = tpu.matmul %27, %8, %cst_32 {dimension_numbers = #tpu.dot_dimension_numbers<[1], [0], [0], [1], [0, 0, 1, 1], [], []>} : vector<64x16xf32>, vector<16x16xf32>, vector<64x16xf32> -> vector<64x16xf32>
    %64 = vector.broadcast %9 : vector<1x16xf32> to vector<64x16xf32>
    %65 = arith.addf %63, %64 : vector<64x16xf32>
    %cst_33 = arith.constant dense<0.000000e+00> : vector<8x16xf32>
    %66 = tpu.matmul %62, %10, %cst_33 {dimension_numbers = #tpu.dot_dimension_numbers<[1], [0], [0], [1], [0, 0, 1, 1], [], []>} : vector<8x16xf32>, vector<16x16xf32>, vector<8x16xf32> -> vector<8x16xf32>
    %67 = vector.broadcast %11 : vector<1x16xf32> to vector<8x16xf32>
    %68 = arith.addf %66, %67 : vector<8x16xf32>
    %cst_34 = arith.constant 0.000000e+00 : f32
    %69 = vector.broadcast %cst_34 : f32 to vector<8x16xf32>
    %70 = arith.cmpf ogt, %68, %69 : vector<8x16xf32>
    %cst_35 = arith.constant 2.000000e-01 : f32
    %71 = vector.broadcast %cst_35 : f32 to vector<8x16xf32>
    %72 = arith.mulf %71, %68 : vector<8x16xf32>
    %73 = arith.select %70, %68, %72 : vector<8x16xi1>, vector<8x16xf32>
    %cst_36 = arith.constant dense<0.000000e+00> : vector<64x16xf32>
    %74 = tpu.matmul %65, %10, %cst_36 {dimension_numbers = #tpu.dot_dimension_numbers<[1], [0], [0], [1], [0, 0, 1, 1], [], []>} : vector<64x16xf32>, vector<16x16xf32>, vector<64x16xf32> -> vector<64x16xf32>
    %75 = vector.broadcast %11 : vector<1x16xf32> to vector<64x16xf32>
    %76 = arith.addf %74, %75 : vector<64x16xf32>
    %cst_37 = arith.constant 0.000000e+00 : f32
    %77 = vector.broadcast %cst_37 : f32 to vector<64x16xf32>
    %78 = arith.cmpf ogt, %76, %77 : vector<64x16xf32>
    %cst_38 = arith.constant 2.000000e-01 : f32
    %79 = vector.broadcast %cst_38 : f32 to vector<64x16xf32>
    %80 = arith.mulf %79, %76 : vector<64x16xf32>
    %81 = arith.select %78, %76, %80 : vector<64x16xi1>, vector<64x16xf32>
    %cst_39 = arith.constant dense<0.000000e+00> : vector<8x2xf32>
    %82 = tpu.matmul %73, %12, %cst_39 {dimension_numbers = #tpu.dot_dimension_numbers<[1], [0], [0], [1], [0, 0, 1, 1], [], []>} : vector<8x16xf32>, vector<16x2xf32>, vector<8x2xf32> -> vector<8x2xf32>
    %83 = vector.extract_strided_slice %82 {offsets = [0, 0], sizes = [8, 1], strides = [1, 1]} : vector<8x2xf32> to vector<8x1xf32>
    %84 = vector.extract_strided_slice %82 {offsets = [0, 1], sizes = [8, 1], strides = [1, 1]} : vector<8x2xf32> to vector<8x1xf32>
    %85 = arith.addf %83, %84 : vector<8x1xf32>
    %86 = vector.broadcast %13 : vector<1x1xf32> to vector<8x1xf32>
    %87 = arith.addf %85, %86 : vector<8x1xf32>
    %88 = vector.extract_strided_slice %12 {offsets = [0, 1], sizes = [16, 1], strides = [1, 1]} : vector<16x2xf32> to vector<16x1xf32>
    %cst_40 = arith.constant dense<0.000000e+00> : vector<64x1xf32>
    %89 = tpu.matmul %81, %88, %cst_40 {dimension_numbers = #tpu.dot_dimension_numbers<[1], [0], [0], [1], [0, 0, 1, 1], [], []>} : vector<64x16xf32>, vector<16x1xf32>, vector<64x1xf32> -> vector<64x1xf32>
    %90 = vector.broadcast %13 : vector<1x1xf32> to vector<64x1xf32>
    %91 = arith.addf %89, %90 : vector<64x1xf32>
    %92 = vector.shape_cast %91 : vector<64x1xf32> to vector<8x8x1xf32>
    %93 = vector.shape_cast %83 : vector<8x1xf32> to vector<1x8x1xf32>
    %94 = vector.broadcast %93 : vector<1x8x1xf32> to vector<8x8x1xf32>
    %95 = arith.addf %92, %94 : vector<8x8x1xf32>
    %cst_41 = arith.constant dense<0xFF800000> : vector<8x1xf32>
    %96 = vector.multi_reduction <maximumf>, %95, %cst_41 [0] : vector<8x8x1xf32> to vector<8x1xf32>
    %97 = arith.maximumf %96, %87 : vector<8x1xf32>
    %98 = vector.shape_cast %97 : vector<8x1xf32> to vector<1x8x1xf32>
    %99 = vector.broadcast %98 : vector<1x8x1xf32> to vector<8x8x1xf32>
    %100 = arith.subf %95, %99 : vector<8x8x1xf32>
    %101 = math.exp %100 : vector<8x8x1xf32>
    %102 = arith.subf %87, %97 : vector<8x1xf32>
    %103 = math.exp %102 : vector<8x1xf32>
    %cst_42 = arith.constant dense<0.000000e+00> : vector<8x1xf32>
    %104 = vector.multi_reduction <add>, %101, %cst_42 [0] : vector<8x8x1xf32> to vector<8x1xf32>
    %105 = arith.addf %104, %103 : vector<8x1xf32>
    %cst_43 = arith.constant 1.000000e+00 : f32
    %106 = vector.broadcast %cst_43 : f32 to vector<8x1xf32>
    %107 = arith.divf %106, %105 : vector<8x1xf32>
    %108 = vector.shape_cast %81 : vector<64x16xf32> to vector<8x8x16xf32>
    %109 = vector.broadcast %103 : vector<8x1xf32> to vector<8x16xf32>
    %110 = arith.mulf %109, %73 : vector<8x16xf32>
    %111 = vector.broadcast %101 : vector<8x8x1xf32> to vector<8x8x16xf32>
    %112 = arith.mulf %111, %108 : vector<8x8x16xf32>
    %cst_44 = arith.constant dense<0.000000e+00> : vector<8x16xf32>
    %113 = vector.multi_reduction <add>, %112, %cst_44 [0] : vector<8x8x16xf32> to vector<8x16xf32>
    %114 = arith.addf %110, %113 : vector<8x16xf32>
    %115 = vector.broadcast %107 : vector<8x1xf32> to vector<8x16xf32>
    %116 = arith.mulf %114, %115 : vector<8x16xf32>
    %cst_45 = arith.constant 0.000000e+00 : f32
    %117 = vector.broadcast %cst_45 : f32 to vector<8x16xf32>
    %118 = arith.cmpf ogt, %116, %117 : vector<8x16xf32>
    %cst_46 = arith.constant 2.000000e-01 : f32
    %119 = vector.broadcast %cst_46 : f32 to vector<8x16xf32>
    %120 = arith.mulf %119, %116 : vector<8x16xf32>
    %121 = arith.select %118, %116, %120 : vector<8x16xi1>, vector<8x16xf32>
    %cst_47 = arith.constant dense<0.000000e+00> : vector<8x128xf32>
    %122 = tpu.matmul %121, %14, %cst_47 {dimension_numbers = #tpu.dot_dimension_numbers<[1], [0], [0], [1], [0, 0, 1, 1], [], []>} : vector<8x16xf32>, vector<16x128xf32>, vector<8x128xf32> -> vector<8x128xf32>
    %123 = vector.broadcast %15 : vector<1x128xf32> to vector<8x128xf32>
    %124 = arith.addf %122, %123 : vector<8x128xf32>
    %c0_48 = arith.constant 0 : index
    %c0_49 = arith.constant 0 : index
    %125 = vector.load %arg3[%c0_48, %c0_49] : memref<8x128xf32, #tpu.memory_space<vmem>>, vector<8x128xf32>
    tpu.vector_store %arg3[%c0_48, %c0_49], %124 {strides = array<i32>} : memref<8x128xf32, #tpu.memory_space<vmem>>, vector<8x128xf32>,
    return
  }
  func.func @transform_0(%arg0: i32) -> (i32, i32, i32) {
    %c0_i32 = arith.constant 0 : i32
    %c0_i32_0 = arith.constant 0 : i32
    %c0_i32_1 = arith.constant 0 : i32
    return %c0_i32, %arg0, %c0_i32_0 : i32, i32, i32
  }
  func.func @transform_1(%arg0: i32) -> (i32, i32) {
    %c0_i32 = arith.constant 0 : i32
    %c0_i32_0 = arith.constant 0 : i32
    %c0_i32_1 = arith.constant 0 : i32
    return %c0_i32, %c0_i32_0 : i32, i32
  }
  func.func @transform_2(%arg0: i32) -> (i32, i32) {
    %c0_i32 = arith.constant 0 : i32
    %c0_i32_0 = arith.constant 0 : i32
    return %arg0, %c0_i32 : i32, i32
  }
}

</mosaic_0001>

<bundles_post_ra>
// kernel: tpu_custom_call.1
= control target key start
LH: loop header
LB: loop body
LE: loop exit
PB: predicated region body
PF: predicated region fallthrough
CT: control target
= control target key end

     0   :  { %7 = vsyncpa [#allocation3], 0  ;;  %s2649_s0 = inlined_call_operand.hbm [shape: f32[8,16,32], index: 0, kind: input, shape index: {}]   ;;  %s2650_s1 = inlined_call_operand.hbm [shape: f32[200,128], index: 1, kind: input, shape index: {}]   ;;  %s2651_s2 = inlined_call_operand.hbm [shape: f32[16,128], index: 2, kind: output, shape index: {}]  }
   0x1   :  { %9 = vsyncpa [#allocation3 + $0x1], 0 }
   0x2   :  { %10 = vsyncpa [#allocation6], 0 }
   0x3   :  { %11 = vsyncpa [#allocation4], 0 }
   0x4   :  { %13 = vsyncpa [#allocation4 + $0x1], 0  ;;  %s2260_s9 = smov 0   ;;  %s2262_s10 = smov 0  }
   0x5   :  { %s2264_s11 = smov 0   ;;  %s2266_s12 = smov 0  }
   0x6 LB: > { %s2281_s13 = sadd.s32 4294967295, %s2231_s12   ;;  %s1704_s14 = sadd.s32 4294967294, %s2231_s12   ;;  %s2231_s12 = sphi %s2266_s12, %s2675_s12   ;;  %s2227_s11 = sphi %s2264_s11, %s2674_s11   ;;  %s2223_s10 = sphi %s2262_s10, %s2673_s10   ;;  %s2219_s9 = sphi %s2260_s9, %s2672_s9  }
   0x7   : > { %s2285_s15 = sadd.s32 1, %s2231_s12   ;;  %s26_s16 = sadd.s32 1, %s2227_s11 }
   0x8   : > { %s23_s17 = ssub.s32 %s2231_s12, %s2285_s15  ;;  %p33_p0 = scmp.ne.s32.totalorder %s2227_s11, %s2223_s10 }
   0x9   : > { %p24_p1 = scmp.eq.s32.totalorder %s23_s17, 0  ;;  %p34_p2 = scmp.eq.s32.totalorder %s2231_s12, 0 }
   0xa   : > { %p39_p3 = scmp.ne.s32.totalorder %s2223_s10, %s2219_s9  ;;  %p2652_p4 = scmp.eq.s32.totalorder %s2281_s13, 0 }
   0xb   : > { %s2297_s18 = scalar_select %p24_p1, %s2227_s11, %s26_s16  }
   0xc   : > { %p2299_p5 = por %p34_p2, %p33_p0  ;;  %p2305_p6 = por %p2652_p4, %p39_p3 }
   0xd   : > { %p84_p7 = scmp.eq.s32.totalorder %s2281_s13, 1  ;;  %p90_p8 = scmp.eq.s32.totalorder %s1704_s14, 1 }
   0xe   : > { %s2656_s19 = scalar_select %p2299_p5, 1, 0 }
   0xf   : > { %s2657_s20 = scalar_select %p2305_p6, 1, 0 }
  0x10   : > { %p1705_p9 = scmp.ge.s32.totalorder %s2231_s12, 1  ;;  %p97_p10 = scmp.lt.s32.totalorder %s2231_s12, 3 }
  0x11   : > { %p2312_p11 = por %p84_p7, %p33_p0  ;;  %p2316_p12 = por %p90_p8, %p39_p3 }
  0x12   : > { %p2320_p13 = pnand %p1705_p9, %p97_p10  ;;  %s2233_s24 = smov [#allocation5]  }
  0x13   : > { %s2658_s21 = scalar_select %p2312_p11, 1, 0 }
  0x14   : > { %s2659_s22 = scalar_select %p2316_p12, 1, 0 }
  0x15   : > { %s2660_s23 = scalar_select %p2320_p13, 1, 0 }
  0x16   : > { %p2000_p1 = pneg %p2320_p13  ;;  %s109_s25 = sshll.u32 %s2233_s24, 4  ;;  %s110_s25 = int_to_ptr.vmem [resolvable:$true] %s109_s25 }
  0x17   : > { %s123_s27 = sand.u32 1, %s2227_s11   ;;  %s2103_s30 = scalar_lea.hbm %s2650_s1, 3200 }
  0x18   : > { %p2328_p2 = pnand %p2000_p1, %p2652_p4  ;;  %p2104_p7 = scmp.ne.s32.totalorder %s2650_s1, %s2103_s30 }
  0x19   : > { %p2110_p1 = scmp.lt.u32.totalorder %s2103_s30, %s2650_s1 }
  0x1a   : > { %p2105_p8 = pneg %p2328_p2 }
  0x1c   : > { %p2106_p9 = pnand %p2105_p8, %p2104_p7 }
  0x1e   : > { %p2107_p10 = pneg %p2106_p9 }
  0x20   : > { %p2112_p4 = pnand %p2110_p1, %p2107_p10 }
  0x22   : > { %2115 = shalt.err (!%p2112_p4)
}
  0x23   : > { %s2116_s7 = scalar_lea.vmem %s110_s25, 3200  ;;  %p2124_p11 = scmp.lt.s32.totalorder %s110_s25, %s110_s25 }
  0x24   : > { %p2117_p0 = scmp.ne.s32.totalorder %s110_s25, %s2116_s7  ;;  %p2125_p6 = scmp.lt.s32.totalorder %s2116_s7, %s2116_s7 }
  0x26   : > { %p2119_p3 = pnand %p2117_p0, %p2105_p8  ;;  %p2126_p13 = por %p2125_p6, %p2124_p11 }
  0x28   : > { %p2120_p12 = pneg %p2119_p3 }
  0x2a   : > { %p2127_p5 = pnand %p2126_p13, %p2120_p12 }
  0x2c   : > { %2130 = shalt.err (!%p2127_p5)
}
  0x2d   : > { %s2234_s8 = smov 128   ;;  %s2235_s14 = smov 8  }
  0x2e   : > { %2003 = dma.hbm_to_vmem [thread:$0]  (!%p2328_p2), %s2650_s1, 3200, %s110_s25, [#allocation6], %s2234_s8, %s2234_s8, %s2235_s14  }
  0x2f   : > { %p2662_p4 = scmp.ne.s32.totalorder %s2656_s19, 0  ;;  %p2663_p0 = scmp.lt.s32.totalorder %s2231_s12, 2 }
  0x30   : > { %s1708_s28 = sshll.u32 %s123_s27, 6  ;;  %s1709_s29 = sshll.u32 %s2231_s12, 7 }
  0x31   : > { %p2358_p3 = pnand %p2663_p0, %p2662_p4  ;;  %s2366_s26 = scalar_lea.hbm %s2649_s0, %s1709_s29 }
  0x32   : > { %s127_s25 = scalar_lea.vmem [#allocation2], %s1708_s28  ;;  %s2370_s4 = scalar_lea.sflag [#allocation3], %s123_s27 }
  0x33   : > { %s133_s19 = sshll.u32 %s127_s25, 4  ;;  %s2131_s5 = scalar_lea.hbm %s2366_s26, 1024  ;;  %s2368_s19 = int_to_ptr.vmem [resolvable:$true] %s133_s19 }
  0x34   : > { %p2132_p5 = scmp.ne.s32.totalorder %s2366_s26, %s2131_s5  ;;  %p2133_p6 = pneg %p2358_p3 }
  0x35   : > { %s2136_s16 = scalar_lea.hbm %s2649_s0, 2048  ;;  %p2137_p13 = scmp.lt.u32.totalorder %s2366_s26, %s2649_s0 }
  0x36   : > { %p2134_p11 = pnand %p2133_p6, %p2132_p5  ;;  %p2138_p2 = scmp.lt.u32.totalorder %s2136_s16, %s2131_s5 }
  0x37   : > { %p2140_p8 = scmp.lt.u32.totalorder %s2131_s5, %s2366_s26 }
  0x38   : > { %p2135_p12 = pneg %p2134_p11  ;;  %p2139_p7 = por %p2138_p2, %p2137_p13 }
  0x3a   : > { %p2141_p9 = por %p2140_p8, %p2139_p7 }
  0x3c   : > { %p2142_p10 = pnand %p2141_p9, %p2135_p12 }
  0x3e   : > { %2145 = shalt.err (!%p2142_p10)
}
  0x3f   : > { %s2146_s27 = scalar_lea.vmem %s2368_s19, 1024  ;;  %s2236_s28 = smov [#allocation2]  }
  0x40   : > { %p2147_p1 = scmp.ne.s32.totalorder %s2368_s19, %s2146_s27  ;;  %s2151_s30 = sshll.u32 %s2236_s28, 4  ;;  %s2152_s30 = int_to_ptr.vmem [resolvable:$false] %s2151_s30 }
  0x41   : > { %s2153_s3 = scalar_lea.vmem %s2152_s30, 2048  ;;  %p2154_p5 = scmp.lt.s32.totalorder %s2368_s19, %s2152_s30 }
  0x42   : > { %p2149_p4 = pnand %p2147_p1, %p2133_p6  ;;  %p2155_p11 = scmp.lt.s32.totalorder %s2153_s3, %s2146_s27 }
  0x44   : > { %p2150_p0 = pneg %p2149_p4  ;;  %p2156_p13 = por %p2155_p11, %p2154_p5 }
  0x46   : > { %p2157_p2 = pnand %p2156_p13, %p2150_p0 }
  0x48   : > { %2160 = shalt.err (!%p2157_p2)
}
  0x49   : > { %s2237_s25 = smov 256   ;;  %p2665_p6 = scmp.ne.s32.totalorder %s2660_s23, 0 }
  0x4a   : > { %2007 = dma.hbm_to_vmem [thread:$0]  (!%p2358_p3), %s2366_s26, 1024, %s2368_s19, %s2370_s4, %s2237_s25, %s2234_s8, %s2235_s14  }
  0x4b   : > { %145 = sbr.rel (%p2665_p6) target bundleno = 2133 (0x855), region = 28  ;;  %s2403_s5 = sand.u32 (!%p2665_p6), 1, %s2223_s10  }
  0x4c   : > { %s1711_s6 = sshll.u32 (!%p2665_p6), %s2403_s5, 6  ;;  %s148_s7 = scalar_lea.sflag (!%p2665_p6), [#allocation3], %s2403_s5 }
  0x4d   : > { %s151_s16 = scalar_lea.vmem (!%p2665_p6), [#allocation2], %s1711_s6  ;;  %p2666_p12 = scmp.ne.s32.totalorder (!%p2665_p6), %s2657_s20, 0 }
  0x52   : > { %2206 = dma.done.wait (%p2666_p12), %s148_s7, 1024  }
  0x53   : > { %2208 = vsyncadd (%p2666_p12), %s148_s7, 4294966272  ;;  %p2667_p7 = scmp.eq.s32.totalorder %s2281_s13, 0 }
  0x55   : > { %2210 = dma.done.wait (%p2667_p7), [#allocation6], 3200   ;;  %p2668_p3 = pmov %p2667_p7 }
  0x56   : > { %vm213_vm0 = vcmask 261120   ;;  %v176_v0 = vld [vmem:[#allocation5] sm:$0xff]  ;;  %v177_v1 = vld [vmem:[#allocation5 + $0x8] sm:$0xff]  ;;  %v178_v2 = vld [vmem:[#allocation5 + $0x10] sm:$0xff]  ;;  %vm371_vm3 = vcmask 130048   ;;  %v2238_v50 = vmov 0  }
  0x57   : > { %2212 = vsyncadd (%p2668_p3), [#allocation6], 4294964096  ;;  %v1954_v3 = vpack.c.bf16 %v177_v1, %v176_v0  ;;  %v179_v4 = vld [vmem:[#allocation5 + $0x18] sm:$0xff]  ;;  %v201_v5 = vld [vmem:[%s151_s16] sm:$0xff]  ;;  %2059 = vset.pattern.permute.xlu1 %v2238_v50  ;;  %2058 = vset.pattern.permute.xlu0 %v2238_v50  ;;  %vm501_vm10 = vcmask 7168   ;;  %s2240_s20 = smov 112  }
  0x58   : > { %v1958_v6 = vpack.c.bf16 %v179_v4, %v178_v2  ;;  %1845 = vmatprep.mubr.msk.f32.mxu0 %vm213_vm0, %v201_v5  ;;  %v202_v7 = vld [vmem:[%s151_s16 + $0x8] sm:$0xff]  ;;  %v203_v8 = vld [vmem:[%s151_s16 + $0x10] sm:$0xff]  ;;  %v204_v9 = vld [vmem:[%s151_s16 + $0x18] sm:$0xff]  ;;  %vm2241_vm11 = vmmov 0   ;;  %vm716_vm14 = vcmask 64512   ;;  %s2243_s23 = smov 127  }
  0x59   : > { %1955 = vmatprep.subr.bf16.mxu0 %v1954_v3  ;;  %v205_v10 = vld [vmem:[%s151_s16 + $0x20] sm:$0xff]  ;;  %v206_v11 = vld [vmem:[%s151_s16 + $0x28] sm:$0xff]  ;;  %v207_v12 = vld [vmem:[%s151_s16 + $0x30] sm:$0xff]  ;;  %s1713_s8 = sshll.u32 %s2403_s5, 3  ;;  %s1768_s14 = sshll.u32 %s2281_s13, 7 }
  0x5a   : > { %1957 = vmatpush3.bf16.msra.mxu0 %v1954_v3  ;;  %v208_v13 = vld [vmem:[%s151_s16 + $0x38] sm:$0xff]  ;;  %v181_v14 = vld [vmem:[#allocation5 + $0x28] sm:$0xff]  ;;  %v182_v15 = vld [vmem:[#allocation5 + $0x30] sm:$0xff]  ;;  %s175_s24 = scalar_lea.vmem [#allocation7], %s1713_s8  ;;  %s2605_s17 = scalar_lea.hbm %s2651_s2, %s1768_s14 }
  0x5b   : > { %1959 = vmatprep.subr.bf16.mxu0 %v1958_v6  ;;  %v1962_v16 = vpack.c.bf16 %v182_v15, %v181_v14  ;;  %v1714_v17 = vld [vmem:[#allocation5 + $0x20] ss:$0 sm:$0xff]  ;;  %v1723_v53 = vld [vmem:[#allocation5 + $0x38] ss:$0 sm:$0xff]  ;;  %s1624_s26 = sshll.u32 %s175_s24, 4  ;;  %s1611_s29 = scalar_lea.sflag [#allocation4], %s2403_s5  ;;  %s2607_s26 = int_to_ptr.vmem [resolvable:$true] %s1624_s26 }
  0x5c   : > { %s2161_s27 = scalar_lea.vmem %s2607_s26, 128  ;;  %p2669_p9 = scmp.ne.s32.totalorder %s2658_s21, 0 }
  0x5d   : > { %1990 = vmatprep.subr.bf16.mxu1 %v1962_v16  ;;  %p2162_p8 = scmp.ne.s32.totalorder %s2607_s26, %s2161_s27  ;;  %s2244_s13 = smov [#allocation7]  }
  0x5e   : > { %1961 = vmatpush3.bf16.msra.mxu0 %v1958_v6  ;;  %1991 = vmatpush3.bf16.msra.mxu1 %v1962_v16  ;;  %s2165_s28 = sshll.u32 %s2244_s13, 4  ;;  %s2166_s28 = int_to_ptr.vmem [resolvable:$false] %s2165_s28 }
  0x5f   : > { %1963 = vmatprep.subr.bf16.mxu0 %v1962_v16  ;;  %p2163_p10 = pnand %p2162_p8, %p2669_p9  ;;  %s2167_s30 = scalar_lea.vmem %s2166_s28, 256 }
  0x60   : > { %p2168_p4 = scmp.lt.s32.totalorder %s2607_s26, %s2166_s28  ;;  %p2169_p0 = scmp.lt.s32.totalorder %s2167_s30, %s2161_s27 }
  0x61   : > { %1846 = vmatmul.mubr.msk.f32.vlgmr.msra.gmra.mrb[0].mxu0 %vm213_vm0, %v202_v7  ;;  %p2164_p1 = pneg %p2163_p10 }
  0x62   : > { %1848 = vmatprep.mubr.msk.f32.mxu0 %vm213_vm0, %v203_v8  ;;  %1965 = vmatpush3.bf16.msra.mxu0 %v1962_v16  ;;  %p2170_p5 = por %p2169_p0, %p2168_p4 }
  0x64   : > { %p2171_p11 = pnand %p2170_p5, %p2164_p1 }
  0x65   : > { %1849 = vmatmul.mubr.msk.f32.gmra.mrb[2].mxu0 %vm213_vm0, %v204_v9 }
  0x66   : > { %1851 = vmatprep.mubr.msk.f32.mxu0 %vm213_vm0, %v205_v10 }
  0x69   : > { %1852 = vmatmul.mubr.msk.f32.gmra.mrb[4].mxu0 %vm213_vm0, %v206_v11 }
  0x6a   : > { %1854 = vmatprep.mubr.msk.f32.mxu0 %vm213_vm0, %v207_v12 }
  0x6d   : > { %1855 = vmatmul.mubr.msk.f32.gmra.mrb[6].mxu0 %vm213_vm0, %v208_v13 }
 0x134   : > { %v1847_v18 = vpop.f32.mrb[0].mxu0 }
 0x135   : > { %v310_v19 = vadd.f32 %v1847_v18, %v1714_v17  ;;  %v304_v20 = vpop.f32.mrb[1].mxu0 }
 0x136   : > { %v305_v21 = vadd.f32 %v1714_v17, %v304_v20 }
 0x137   : > { %v352_v22 = vmul.f32 0.2, %v310_v19  ;;  %vm344_vm1 = vcmp.gt.f32.partialorder %v310_v19, 0.0 }
 0x138   : > { %vm343_vm2 = vcmp.gt.f32.partialorder %v305_v21, 0.0  ;;  %v351_v23 = vmul.f32 0.2, %v305_v21  ;;  %v1850_v24 = vpop.f32.mrb[2].mxu0 }
 0x139   : > { %v320_v25 = vadd.f32 %v1850_v24, %v1714_v17  ;;  %v314_v26 = vpop.f32.mrb[3].mxu0  ;;  %v2425_v29 = vsel %vm344_vm1, %v310_v19, %v352_v22 }
 0x13a   : > { %v315_v27 = vadd.f32 %v1714_v17, %v314_v26  ;;  %v2423_v28 = vsel %vm343_vm2, %v305_v21, %v351_v23 }
 0x13b   : > { %v354_v30 = vmul.f32 0.2, %v320_v25  ;;  %1861 = vmatprep.mubr.msk.f32.mxu0 %vm371_vm3, %v2423_v28  ;;  %vm346_vm4 = vcmp.gt.f32.partialorder %v320_v25, 0.0 }
 0x13c   : > { %v353_v31 = vmul.f32 0.2, %v315_v27  ;;  %v1853_v32 = vpop.f32.mrb[4].mxu0  ;;  %1862 = vmatmul.mubr.msk.f32.vlgmr.msra.gmra.mrb[8].mxu0 %vm371_vm3, %v2425_v29  ;;  %vm345_vm5 = vcmp.gt.f32.partialorder %v315_v27, 0.0 }
 0x13d   : > { %v330_v33 = vadd.f32 %v1853_v32, %v1714_v17  ;;  %v324_v34 = vpop.f32.mrb[5].mxu0  ;;  %v2435_v38 = vsel %vm346_vm4, %v320_v25, %v354_v30 }
 0x13e   : > { %v325_v35 = vadd.f32 %v1714_v17, %v324_v34  ;;  %v2431_v36 = vsel %vm345_vm5, %v315_v27, %v353_v31 }
 0x13f   : > { %v356_v37 = vmul.f32 0.2, %v330_v33  ;;  %1864 = vmatprep.mubr.msk.f32.mxu1 %vm371_vm3, %v2431_v36  ;;  %vm348_vm6 = vcmp.gt.f32.partialorder %v330_v33, 0.0 }
 0x140   : > { %vm347_vm7 = vcmp.gt.f32.partialorder %v325_v35, 0.0  ;;  %v355_v39 = vmul.f32 0.2, %v325_v35  ;;  %v1856_v40 = vpop.f32.mrb[6].mxu0  ;;  %1865 = vmatmul.mubr.msk.f32.vlgmr.msra.gmra.mrb[0].mxu1 %vm371_vm3, %v2435_v38 }
 0x141   : > { %v340_v41 = vadd.f32 %v1856_v40, %v1714_v17  ;;  %v334_v42 = vpop.f32.mrb[7].mxu0  ;;  %v2443_v46 = vsel %vm348_vm6, %v330_v33, %v356_v37 }
 0x142   : > { %v335_v43 = vadd.f32 %v1714_v17, %v334_v42  ;;  %v2439_v44 = vsel %vm347_vm7, %v325_v35, %v355_v39 }
 0x143   : > { %v358_v45 = vmul.f32 0.2, %v340_v41  ;;  %1867 = vmatprep.mubr.msk.f32.mxu1 %vm371_vm3, %v2439_v44  ;;  %vm350_vm8 = vcmp.gt.f32.partialorder %v340_v41, 0.0 }
 0x144   : > { %vm349_vm9 = vcmp.gt.f32.partialorder %v335_v43, 0.0  ;;  %v357_v47 = vmul.f32 0.2, %v335_v43  ;;  %1868 = vmatmul.mubr.msk.f32.gmra.mrb[2].mxu1 %vm371_vm3, %v2443_v46 }
 0x145   : > { %v2451_v49 = vsel %vm350_vm8, %v340_v41, %v358_v45 }
 0x146   : > { %v2447_v48 = vsel %vm349_vm9, %v335_v43, %v357_v47 }
 0x147   : > { %1870 = vmatprep.mubr.msk.f32.mxu1 %vm371_vm3, %v2447_v48 }
 0x148   : > { %1871 = vmatmul.mubr.msk.f32.gmra.mrb[4].mxu1 %vm371_vm3, %v2451_v49 }
 0x20f   : > { %v1863_v51 = vpop.f32.mrb[8].mxu0 }
 0x210   : > { %v462_v52 = vpop.f32.mrb[9].mxu0  ;;  %v468_v56 = vadd.f32 %v1863_v51, %v1723_v53 }
 0x211   : > { %v463_v57 = vadd.f32 %v1723_v53, %v462_v52 }
 0x212   : > { %v503_v62 = vsel %vm501_vm10, %v468_v56, -inf }
 0x213   : > { %v1866_v54 = vpop.f32.mrb[0].mxu1  ;;  %v502_v1 = vsel %vm501_vm10, %v463_v57, -inf }
 0x214   : > { %v472_v55 = vpop.f32.mrb[1].mxu1  ;;  %v478_v63 = vadd.f32 %v1866_v54, %v1723_v53 }
 0x215   : > { %v473_v2 = vadd.f32 %v1723_v53, %v472_v55 }
 0x216   : > { %v505_v10 = vsel %vm501_vm10, %v478_v63, -inf }
 0x217   : > { %v1869_v58 = vpop.f32.mrb[2].mxu1  ;;  %v504_v13 = vsel %vm501_vm10, %v473_v2, -inf }
 0x218   : > { %v488_v59 = vadd.f32 %v1869_v58, %v1723_v53  ;;  %v482_v60 = vpop.f32.mrb[3].mxu1 }
 0x219   : > { %v483_v61 = vadd.f32 %v1723_v53, %v482_v60 }
 0x21a   : > { %v508_v0 = vsel %vm501_vm10, %v488_v59, -inf }
 0x21b   : > { %v509_v3 = vmax.f32 %v503_v62, %v508_v0  ;;  %v506_v4 = vsel %vm501_vm10, %v483_v61, -inf  ;;  %v1872_v5 = vpop.f32.mrb[4].mxu1 }
 0x21c   : > { %v507_v6 = vmax.f32 %v502_v1, %v506_v4  ;;  %v498_v7 = vadd.f32 %v1872_v5, %v1723_v53  ;;  %v492_v8 = vpop.f32.mrb[5].mxu1 }
 0x21d   : > { %v493_v9 = vadd.f32 %v1723_v53, %v492_v8 }
 0x21e   : > { %v514_v11 = vmax.f32 %v507_v6, %v509_v3  ;;  %v512_v12 = vsel %vm501_vm10, %v498_v7, -inf }
 0x21f   : > { %v513_v14 = vmax.f32 %v505_v10, %v512_v12  ;;  %v510_v15 = vsel %vm501_vm10, %v493_v9, -inf  ;;  %v184_v12 = vld [vmem:[#allocation5 + $0x40] sm:$0xff] }
 0x220   : > { %v511_v16 = vmax.f32 %v504_v13, %v510_v15  ;;  %v185_v13 = vld [vmem:[#allocation5 + $0x48] sm:$0xff]  ;;  %v2242_v15 = vmov 0.0  }
 0x221   : > { %1877 = vmatprep.mubr.msk.f32.mxu1 %vm2241_vm11, %v2242_v15  ;;  %1880 = vmatprep.subr.mxu0 %v2242_v15 }
 0x222   : > { %v515_v17 = vmax.f32 %v511_v16, %v513_v14  ;;  %v1967_v14 = vpack.c.bf16 %v185_v13, %v184_v12  ;;  %1882 = vmatprep.mubr.msk.f32.mxu0 %vm2241_vm11, %v2242_v15  ;;  %v189_v16 = vld [vmem:[#allocation5 + $0x68] sm:$0xff] }
 0x224   : > { %v516_v18 = vmax.f32 %v514_v11, %v515_v17  ;;  %v2239_v11 = vmov 0.0|0.0   ;;  %v190_v17 = vld [vmem:[#allocation5 + $0x70] sm:$0xff] }
 0x225   : > { %1966 = vmatprep.subr.bf16.mxu1 %v2239_v11 }
 0x226   : > { %v521_v19 = vsub.f32 %v483_v61, %v516_v18  ;;  %v522_v20 = vsub.f32 %v488_v59, %v516_v18  ;;  %v523_v21 = vsub.f32 %v493_v9, %v516_v18  ;;  %v524_v22 = vsub.f32 %v498_v7, %v516_v18  ;;  %1968 = vmatpush3.bf16.msra.mxu1 %v1967_v14 }
 0x227   : > { %v517_v23 = vsub.f32 %v463_v57, %v516_v18  ;;  %v518_v24 = vsub.f32 %v468_v56, %v516_v18  ;;  %v519_v25 = vsub.f32 %v473_v2, %v516_v18  ;;  %v520_v26 = vsub.f32 %v478_v63, %v516_v18 }
 0x228   : > { %v533_v33 = vmul.f32 1.442695, %v521_v19  ;;  %v535_v34 = vmul.f32 1.442695, %v522_v20  ;;  %v537_v35 = vmul.f32 1.442695, %v523_v21  ;;  %v1969_v18 = vpack.c.bf16 %v190_v17, %v189_v16 }
 0x229   : > { %v525_v27 = vmul.f32 1.442695, %v517_v23  ;;  %v527_v30 = vmul.f32 1.442695, %v518_v24  ;;  %v529_v31 = vmul.f32 1.442695, %v519_v25 }
 0x22a   : > { %v531_v32 = vmul.f32 1.442695, %v520_v26  ;;  %v539_v37 = vmul.f32 1.442695, %v524_v22  ;;  %1970 = vmatprep.subr.bf16.mxu1 %v1969_v18  ;;  %v195_v16 = vld [vmem:[#allocation5 + $0x98] sm:$0xff]  ;;  %v196_v17 = vld [vmem:[#allocation5 + $0xa0] sm:$0xff] }
 0x22b   : > { %2065 = vpow2.f32 %v525_v27 }
 0x22c   : > { %2067 = vpow2.f32 %v527_v30 }
 0x22d   : > { %2069 = vpow2.f32 %v529_v31 }
 0x22e   : > { %2071 = vpow2.f32 %v531_v32 }
 0x22f   : > { %2073 = vpow2.f32 %v533_v33 }
 0x230   : > { %2075 = vpow2.f32 %v535_v34 }
 0x231   : > { %2077 = vpow2.f32 %v537_v35 }
 0x232   : > { %2079 = vpow2.f32 %v539_v37 }
 0x235   : > { %v2066_v39 = vpop.eup %2065 }
 0x236   : > { %v2068_v40 = vpop.eup %2067  ;;  %v541_v41 = vsel %vm501_vm10, %v2066_v39, 0.0 }
 0x237   : > { %v2070_v42 = vpop.eup %2069  ;;  %v542_v43 = vsel %vm501_vm10, %v2068_v40, 0.0 }
 0x238   : > { %v2072_v45 = vpop.eup %2071  ;;  %v543_v47 = vadd.f32 %v542_v43, %v541_v41  ;;  %v544_v50 = vsel %vm501_vm10, %v2070_v42, 0.0 }
 0x239   : > { %v2074_v51 = vpop.eup %2073  ;;  %v546_v53 = vsel %vm501_vm10, %v2072_v45, 0.0 }
 0x23a   : > { %v545_v52 = vadd.f32 %v544_v50, %v543_v47  ;;  %v2076_v54 = vpop.eup %2075  ;;  %v548_v56 = vsel %vm501_vm10, %v2074_v51, 0.0 }
 0x23b   : > { %v2078_v57 = vpop.eup %2077  ;;  %v550_v59 = vsel %vm501_vm10, %v2076_v54, 0.0 }
 0x23c   : > { %v547_v55 = vadd.f32 %v546_v53, %v545_v52  ;;  %v2080_v60 = vpop.eup %2079  ;;  %v552_v62 = vsel %vm501_vm10, %v2078_v57, 0.0 }
 0x23d   : > { %v554_v0 = vsel %vm501_vm10, %v2080_v60, 0.0 }
 0x23e   : > { %v549_v58 = vadd.f32 %v548_v56, %v547_v55 }
 0x240   : > { %v551_v61 = vadd.f32 %v550_v59, %v549_v58 }
 0x242   : > { %v553_v63 = vadd.f32 %v552_v62, %v551_v61  ;;  %v1732_v61 = vld [vmem:[#allocation5 + $0x50] ss:$0 sm:$0xff] }
 0x244   : > { %v555_v1 = vadd.f32 %v554_v0, %v553_v63  ;;  %v192_v63 = vld [vmem:[#allocation5 + $0x80] sm:$0xff]  ;;  %v193_v0 = vld [vmem:[#allocation5 + $0x88] sm:$0xff] }
 0x246   : > { %2081 = vrcp.f32 %v555_v1 }
 0x250   : > { %v2082_v2 = vpop.eup %2081 }
 0x251   : > { %v560_v3 = vmul.f32 %v2082_v2, %v2070_v42  ;;  %v558_v4 = vmul.f32 %v2082_v2, %v2066_v39  ;;  %v561_v5 = vmul.f32 %v2082_v2, %v2072_v45  ;;  %v559_v6 = vmul.f32 %v2082_v2, %v2068_v40 }
 0x252   : > { %v563_v7 = vmul.f32 %v2082_v2, %v2076_v54  ;;  %v562_v8 = vmul.f32 %v2082_v2, %v2074_v51  ;;  %v565_v9 = vmul.f32 %v2082_v2, %v2080_v60  ;;  %v564_v10 = vmul.f32 %v2082_v2, %v2078_v57  ;;  %v187_v60 = vld [vmem:[#allocation5 + $0x58] sm:$0xff] }
 0x253   : > { %578 = vperm.xlu1 %2059, %v560_v3   ;;  %568 = vperm.xlu0 %2058, %v558_v4   ;;  %v1974_v4 = vpack.c.bf16 %v193_v0, %v192_v63 }
 0x254   : > { %1881 = vmatpush3.msra.mxu0 %v187_v60 }
 0x255   : > { %1973 = vmatprep.subr.bf16.mxu0 %v2239_v11 }
 0x257   : > { %583 = vperm.xlu1 %2059, %v561_v5   ;;  %573 = vperm.xlu0 %2058, %v559_v6  }
 0x25b   : > { %593 = vperm.xlu1 %2059, %v563_v7   ;;  %588 = vperm.xlu0 %2058, %v562_v8  }
 0x25f   : > { %603 = vperm.xlu1 %2059, %v565_v9   ;;  %598 = vperm.xlu0 %2058, %v564_v10  }
 0x263   : > { %796 = vrot.lane.b32.xlu1 %v2425_v29, %s2240_s20  ;;  %794 = vrot.lane.b32.xlu0 %v2423_v28, %s2240_s20 }
 0x267   : > { %800 = vrot.lane.b32.xlu1 %v2435_v38, %s2240_s20  ;;  %798 = vrot.lane.b32.xlu0 %v2431_v36, %s2240_s20 }
 0x26b   : > { %804 = vrot.lane.b32.xlu1 %v2443_v46, %s2240_s20  ;;  %802 = vrot.lane.b32.xlu0 %v2439_v44, %s2240_s20 }
 0x26f   : > { %808 = vrot.lane.b32.xlu1 %v2451_v49, %s2240_s20  ;;  %806 = vrot.lane.b32.xlu0 %v2447_v48, %s2240_s20 }
 0x2d2   : > { %v579_v19 = vpop.permute.xlu1 %578  ;;  %v569_v20 = vpop.permute.xlu0 %568 }
 0x2d3   : > { %v606_v21 = vmul.f32 %v569_v20, %v2423_v28  ;;  %v608_v24 = vmul.f32 %v579_v19, %v2431_v36  ;;  %v1981_v19 = vpack.c.bf16 %v196_v17, %v195_v16  ;;  %v1734_v20 = vld [vmem:[#allocation5 + $0x60] ss:$0 sm:$0xff] }
 0x2d5   : > { %v614_v26 = vsel %vm371_vm3, %v606_v21, 0.0  ;;  %v617_v34 = vsel %vm371_vm3, %v608_v24, 0.0  ;;  %v1736_v21 = vld [vmem:[#allocation5 + $0x78] ss:$0 sm:$0xff] }
 0x2d6   : > { %v584_v22 = vpop.permute.xlu1 %583  ;;  %v574_v23 = vpop.permute.xlu0 %573 }
 0x2d7   : > { %v607_v25 = vmul.f32 %v574_v23, %v2425_v29  ;;  %v609_v27 = vmul.f32 %v584_v22, %v2435_v38 }
 0x2d9   : > { %v615_v30 = vsel %vm371_vm3, %v607_v25, 0.0  ;;  %v619_v37 = vsel %vm371_vm3, %v609_v27, 0.0 }
 0x2da   : > { %v616_v31 = vadd.f32 %v615_v30, %v614_v26  ;;  %v594_v32 = vpop.permute.xlu1 %593  ;;  %v589_v33 = vpop.permute.xlu0 %588 }
 0x2db   : > { %v610_v35 = vmul.f32 %v589_v33, %v2439_v44  ;;  %v611_v36 = vmul.f32 %v594_v32, %v2443_v46 }
 0x2dc   : > { %v618_v28 = vadd.f32 %v617_v34, %v616_v31 }
 0x2dd   : > { %v621_v41 = vsel %vm371_vm3, %v610_v35, 0.0  ;;  %v623_v43 = vsel %vm371_vm3, %v611_v36, 0.0  ;;  %v1745_v36 = vld [vmem:[#allocation5 + $0x90] ss:$0 sm:$0xff] }
 0x2de   : > { %v620_v39 = vadd.f32 %v619_v37, %v618_v28  ;;  %v604_v29 = vpop.permute.xlu1 %603  ;;  %v599_v40 = vpop.permute.xlu0 %598 }
 0x2df   : > { %v612_v38 = vmul.f32 %v599_v40, %v2447_v48  ;;  %v613_v45 = vmul.f32 %v604_v29, %v2451_v49 }
 0x2e0   : > { %v622_v42 = vadd.f32 %v621_v41, %v620_v39 }
 0x2e1   : > { %v625_v44 = vsel %vm371_vm3, %v612_v38, 0.0  ;;  %v627_v51 = vsel %vm371_vm3, %v613_v45, 0.0 }
 0x2e2   : > { %v624_v47 = vadd.f32 %v623_v43, %v622_v42  ;;  %v795_v52 = vpop.permute.xlu0 %794  ;;  %v797_v54 = vpop.permute.xlu1 %796 }
 0x2e4   : > { %v626_v50 = vadd.f32 %v625_v44, %v624_v47 }
 0x2e6   : > { %v628_v46 = vadd.f32 %v627_v51, %v626_v50  ;;  %v799_v56 = vpop.permute.xlu0 %798  ;;  %v801_v48 = vpop.permute.xlu1 %800 }
 0x2e8   : > { %vm629_vm12 = vcmp.gt.f32.partialorder %v628_v46, 0.0  ;;  %v630_v53 = vmul.f32 0.2, %v628_v46 }
 0x2ea   : > { %v631_v55 = vsel %vm629_vm12, %v628_v46, %v630_v53  ;;  %v803_v49 = vpop.permute.xlu0 %802  ;;  %v805_v57 = vpop.permute.xlu1 %804 }
 0x2eb   : > { %1878 = vmatmul.mubr.msk.f32.vlgmr.msra.gmra.mrb[6].mxu1 %vm371_vm3, %v631_v55 }
 0x2ec   : > { %1972 = vmatpush3.bf16.msra.mxu1 %v1969_v18  ;;  %1889 = vmatprep.mubr.msk.f32.mxu1 %vm371_vm3, %v795_v52  ;;  %v2060_v18 = vpack.i.bf16 %v196_v17, %v195_v16 }
 0x2ed   : > { %1980 = vmatprep.subr.bf16.mxu1 %v2239_v11 }
 0x2ee   : > { %v807_v58 = vpop.permute.xlu0 %806  ;;  %v809_v59 = vpop.permute.xlu1 %808  ;;  %2061 = vrot.lane.b32.xlu0 %v2060_v18, %s2243_s23 }
 0x2ef   : > { %1890 = vmatmul.mubr.msk.f32.vlgmr.msra.gmra.mrb[8].mxu1 %vm371_vm3, %v797_v54 }
 0x2f0   : > { %1892 = vmatprep.mubr.msk.f32.mxu1 %vm371_vm3, %v799_v56  ;;  %1982 = vmatpush3.bf16.msra.mxu1 %v1981_v19 }
 0x2f3   : > { %1893 = vmatmul.mubr.msk.f32.gmra.mrb[10].mxu1 %vm371_vm3, %v801_v48 }
 0x2f4   : > { %1895 = vmatprep.mubr.msk.f32.mxu1 %vm371_vm3, %v803_v49 }
 0x2f7   : > { %1896 = vmatmul.mubr.msk.f32.gmra.mrb[12].mxu1 %vm371_vm3, %v805_v57 }
 0x2f8   : > { %1898 = vmatprep.mubr.msk.f32.mxu1 %vm371_vm3, %v807_v58 }
 0x2fb   : > { %1899 = vmatmul.mubr.msk.f32.gmra.mrb[14].mxu1 %vm371_vm3, %v809_v59 }
 0x2fc   : > { %1928 = vmatprep.mubr.msk.f32.mxu1 %vm2241_vm11, %v2242_v15 }
 0x3be   : > { %v705_v62 = vpop.f32.mrb[6].mxu1 }
 0x3bf   : > { %v706_v1 = vadd.f32 %v1732_v61, %v705_v62  ;;  %v1879_v2 = vpop.f32.mrb[7].mxu1 }
 0x3c1   : > { %vm709_vm13 = vcmp.gt.f32.partialorder %v706_v1, 0.0  ;;  %v710_v3 = vmul.f32 0.2, %v706_v1 }
 0x3c2   : > { %v1891_v5 = vpop.f32.mrb[8].mxu1 }
 0x3c3   : > { %v711_v6 = vsel %vm709_vm13, %v706_v1, %v710_v3  ;;  %v892_v7 = vpop.f32.mrb[9].mxu1  ;;  %v898_v26 = vadd.f32 %v1891_v5, %v1736_v21 }
 0x3c4   : > { %1883 = vmatmul.mubr.msk.f32.vlgmr.msra.gmra.mrb[10].mxu0 %vm716_vm14, %v711_v6  ;;  %v893_v25 = vadd.f32 %v1736_v21, %v892_v7 }
 0x3c5   : > { %1975 = vmatpush3.bf16.msra.mxu0 %v1974_v4  ;;  %1905 = vmatprep.mubr.msk.f32.mxu0 %vm2241_vm11, %v2242_v15 }
 0x3c6   : > { %v1894_v8 = vpop.f32.mrb[10].mxu1  ;;  %1977 = vmatprep.subr.bf16.mxu0 %v1974_v4 }
 0x3c7   : > { %v902_v9 = vpop.f32.mrb[11].mxu1  ;;  %v908_v30 = vadd.f32 %v1894_v8, %v1736_v21 }
 0x3c8   : > { %v903_v27 = vadd.f32 %v1736_v21, %v902_v9 }
 0x3ca   : > { %v1897_v10 = vpop.f32.mrb[12].mxu1 }
 0x3cb   : > { %v912_v12 = vpop.f32.mrb[13].mxu1  ;;  %v918_v32 = vadd.f32 %v1897_v10, %v1736_v21 }
 0x3cc   : > { %v913_v31 = vadd.f32 %v1736_v21, %v912_v12  ;;  %v1756_v12 = vld [vmem:[#allocation5 + $0xa8] ss:$0 sm:$0xff] }
 0x3ce   : > { %v1900_v13 = vpop.f32.mrb[14].mxu1 }
 0x3cf   : > { %v922_v14 = vpop.f32.mrb[15].mxu1  ;;  %v928_v34 = vadd.f32 %v1900_v13, %v1736_v21 }
 0x3d0   : > { %v923_v33 = vadd.f32 %v1736_v21, %v922_v14 }
 0x497   : > { %v786_v22 = vpop.f32.mrb[10].mxu0 }
 0x498   : > { %v787_v23 = vadd.f32 %v1734_v20, %v786_v22  ;;  %v1884_v24 = vpop.f32.mrb[11].mxu0 }
 0x49a   : > { %1906 = vmatmul.mubr.msk.f32.vlgmr.msra.gmra.mrb[12].mxu0 %vm371_vm3, %v787_v23 }
 0x49b   : > { %1979 = vmatpush3.bf16.msra.mxu0 %v1974_v4  ;;  %1912 = vmatprep.mubr.msk.f32.mxu0 %vm371_vm3, %v893_v25 }
 0x49c   : > { %1987 = vmatprep.subr.bf16.mxu0 %v2239_v11  ;;  %v2062_v11 = vpop.permute.xlu0 %2061 }
 0x49d   : > { %v2064_v35 = vunpack.i.h.bf16 %v2062_v11  ;;  %v2063_v28 = vunpack.i.l.bf16 %v2062_v11 }
 0x49e   : > { %1913 = vmatmul.mubr.msk.f32.vlgmr.msra.gmra.mrb[14].mxu0 %vm371_vm3, %v898_v26 }
 0x49f   : > { %1915 = vmatprep.mubr.msk.f32.mxu0 %vm371_vm3, %v903_v27  ;;  %v1983_v37 = vpack.c.bf16 %v2064_v35, %v2063_v28 }
 0x4a1   : > { %1984 = vmatprep.subr.bf16.mxu1 %v1983_v37 }
 0x4a2   : > { %1916 = vmatmul.mubr.msk.f32.gmra.mrb[16].mxu0 %vm371_vm3, %v908_v30 }
 0x4a3   : > { %1918 = vmatprep.mubr.msk.f32.mxu0 %vm371_vm3, %v913_v31 }
 0x4a6   : > { %1919 = vmatmul.mubr.msk.f32.gmra.mrb[18].mxu0 %vm371_vm3, %v918_v32 }
 0x4a7   : > { %1921 = vmatprep.mubr.msk.f32.mxu0 %vm371_vm3, %v923_v33 }
 0x4aa   : > { %1922 = vmatmul.mubr.msk.f32.gmra.mrb[20].mxu0 %vm371_vm3, %v928_v34 }
 0x4ab   : > { %1951 = vmatprep.mubr.msk.f32.mxu0 %vm2241_vm11, %v2242_v15 }
 0x56d   : > { %v1004_v39 = vpop.f32.mrb[12].mxu0 }
 0x56e   : > { %v1005_v29 = vadd.f32 %v1745_v36, %v1004_v39  ;;  %v1907_v40 = vpop.f32.mrb[13].mxu0 }
 0x570   : > { %vm1008_vm15 = vcmp.gt.f32.partialorder %v1005_v29, 0.0  ;;  %v1009_v41 = vmul.f32 0.2, %v1005_v29 }
 0x571   : > { %v1914_v38 = vpop.f32.mrb[14].mxu0 }
 0x572   : > { %v2529_v42 = vsel %vm1008_vm15, %v1005_v29, %v1009_v41  ;;  %v1107_v43 = vadd.f32 %v1914_v38, %v1745_v36  ;;  %v1101_v45 = vpop.f32.mrb[15].mxu0 }
 0x573   : > { %v1102_v47 = vadd.f32 %v1745_v36, %v1101_v45  ;;  %1929 = vmatmul.mubr.msk.f32.vlgmr.msra.gmra.mrb[16].mxu1 %vm371_vm3, %v2529_v42 }
 0x574   : > { %v1149_v15 = vmul.f32 0.2, %v1107_v43  ;;  %1986 = vmatpush3.bf16.msra.mxu1 %v1983_v37  ;;  %vm1141_vm0 = vcmp.gt.f32.partialorder %v1107_v43, 0.0 }
 0x575   : > { %vm1140_vm1 = vcmp.gt.f32.partialorder %v1102_v47, 0.0  ;;  %v1148_v44 = vmul.f32 0.2, %v1102_v47  ;;  %v1917_v50 = vpop.f32.mrb[16].mxu0 }
 0x576   : > { %v1117_v51 = vadd.f32 %v1917_v50, %v1745_v36  ;;  %v1111_v52 = vpop.f32.mrb[17].mxu0  ;;  %v2535_v54 = vsel %vm1141_vm0, %v1107_v43, %v1149_v15 }
 0x577   : > { %v1112_v46 = vadd.f32 %v1745_v36, %v1111_v52  ;;  %v2533_v53 = vsel %vm1140_vm1, %v1102_v47, %v1148_v44 }
 0x578   : > { %v1151_v55 = vmul.f32 0.2, %v1117_v51  ;;  %1935 = vmatprep.mubr.msk.f32.mxu1 %vm371_vm3, %v2533_v53  ;;  %vm1143_vm2 = vcmp.gt.f32.partialorder %v1117_v51, 0.0 }
 0x579   : > { %vm1142_vm4 = vcmp.gt.f32.partialorder %v1112_v46, 0.0  ;;  %v1150_v56 = vmul.f32 0.2, %v1112_v46  ;;  %v1920_v48 = vpop.f32.mrb[18].mxu0  ;;  %1936 = vmatmul.mubr.msk.f32.vlgmr.msra.gmra.mrb[18].mxu1 %vm371_vm3, %v2535_v54 }
 0x57a   : > { %v1127_v49 = vadd.f32 %v1920_v48, %v1745_v36  ;;  %v1121_v57 = vpop.f32.mrb[19].mxu0  ;;  %v2545_v61 = vsel %vm1143_vm2, %v1117_v51, %v1151_v55 }
 0x57b   : > { %v1122_v58 = vadd.f32 %v1745_v36, %v1121_v57  ;;  %v2541_v59 = vsel %vm1142_vm4, %v1112_v46, %v1150_v56 }
 0x57c   : > { %v1153_v60 = vmul.f32 0.2, %v1127_v49  ;;  %1938 = vmatprep.mubr.msk.f32.mxu1 %vm371_vm3, %v2541_v59  ;;  %vm1145_vm5 = vcmp.gt.f32.partialorder %v1127_v49, 0.0 }
 0x57d   : > { %vm1144_vm6 = vcmp.gt.f32.partialorder %v1122_v58, 0.0  ;;  %v1152_v62 = vmul.f32 0.2, %v1122_v58  ;;  %v1923_v63 = vpop.f32.mrb[20].mxu0  ;;  %1939 = vmatmul.mubr.msk.f32.gmra.mrb[20].mxu1 %vm371_vm3, %v2545_v61 }
 0x57e   : > { %v1137_v0 = vadd.f32 %v1923_v63, %v1745_v36  ;;  %v1131_v1 = vpop.f32.mrb[21].mxu0  ;;  %v2553_v5 = vsel %vm1145_vm5, %v1127_v49, %v1153_v60 }
 0x57f   : > { %v1132_v2 = vadd.f32 %v1745_v36, %v1131_v1  ;;  %v2549_v3 = vsel %vm1144_vm6, %v1122_v58, %v1152_v62 }
 0x580   : > { %v1155_v4 = vmul.f32 0.2, %v1137_v0  ;;  %1941 = vmatprep.mubr.msk.f32.mxu1 %vm371_vm3, %v2549_v3  ;;  %vm1147_vm7 = vcmp.gt.f32.partialorder %v1137_v0, 0.0 }
 0x581   : > { %vm1146_vm8 = vcmp.gt.f32.partialorder %v1132_v2, 0.0  ;;  %v1154_v6 = vmul.f32 0.2, %v1132_v2  ;;  %1942 = vmatmul.mubr.msk.f32.gmra.mrb[22].mxu1 %vm371_vm3, %v2553_v5 }
 0x582   : > { %v2561_v8 = vsel %vm1147_vm7, %v1137_v0, %v1155_v4 }
 0x583   : > { %v2557_v7 = vsel %vm1146_vm8, %v1132_v2, %v1154_v6 }
 0x584   : > { %1944 = vmatprep.mubr.msk.f32.mxu1 %vm371_vm3, %v2557_v7 }
 0x585   : > { %1945 = vmatmul.mubr.msk.f32.gmra.mrb[24].mxu1 %vm371_vm3, %v2561_v8 }
 0x646   : > { %v1233_v9 = vpop.f32.mrb[16].mxu1 }
 0x647   : > { %1238 = vrot.lane.b32.xlu1 %v1233_v9, %s2243_s23  ;;  %v1930_v10 = vpop.f32.mrb[17].mxu1 }
 0x64c   : > { %v1937_v13 = vpop.f32.mrb[18].mxu1 }
 0x64d   : > { %v1351_v14 = vadd.f32 %v1937_v13, %v1756_v12  ;;  %v1345_v16 = vpop.f32.mrb[19].mxu1 }
 0x64e   : > { %v1346_v17 = vadd.f32 %v1756_v12, %v1345_v16 }
 0x64f   : > { %v1385_v18 = vadd.f32 %v1351_v14, %v1233_v9 }
 0x650   : > { %v1384_v19 = vadd.f32 %v1346_v17, %v1233_v9  ;;  %v1940_v20 = vpop.f32.mrb[20].mxu1 }
 0x651   : > { %v1361_v21 = vadd.f32 %v1940_v20, %v1756_v12  ;;  %v1355_v22 = vpop.f32.mrb[21].mxu1  ;;  %v1393_v11 = vsel %vm501_vm10, %v1385_v18, -inf }
 0x652   : > { %v1356_v23 = vadd.f32 %v1756_v12, %v1355_v22  ;;  %v1392_v36 = vsel %vm501_vm10, %v1384_v19, -inf }
 0x653   : > { %v1387_v24 = vadd.f32 %v1361_v21, %v1233_v9 }
 0x654   : > { %v1386_v25 = vadd.f32 %v1356_v23, %v1233_v9  ;;  %v1943_v26 = vpop.f32.mrb[22].mxu1 }
 0x655   : > { %v1371_v27 = vadd.f32 %v1943_v26, %v1756_v12  ;;  %v1365_v30 = vpop.f32.mrb[23].mxu1  ;;  %v1395_v45 = vsel %vm501_vm10, %v1387_v24, -inf }
 0x656   : > { %v1366_v31 = vadd.f32 %v1756_v12, %v1365_v30  ;;  %v1394_v44 = vsel %vm501_vm10, %v1386_v25, -inf }
 0x657   : > { %v1389_v32 = vadd.f32 %v1371_v27, %v1233_v9 }
 0x658   : > { %v1388_v33 = vadd.f32 %v1366_v31, %v1233_v9  ;;  %v1946_v34 = vpop.f32.mrb[24].mxu1 }
 0x659   : > { %v1398_v35 = vsel %vm501_vm10, %v1389_v32, -inf  ;;  %v1381_v28 = vadd.f32 %v1946_v34, %v1756_v12  ;;  %v1375_v37 = vpop.f32.mrb[25].mxu1 }
 0x65a   : > { %v1399_v39 = vmax.f32 %v1393_v11, %v1398_v35  ;;  %v1396_v29 = vsel %vm501_vm10, %v1388_v33, -inf  ;;  %v1376_v40 = vadd.f32 %v1756_v12, %v1375_v37 }
 0x65b   : > { %v1397_v41 = vmax.f32 %v1392_v36, %v1396_v29  ;;  %v1391_v38 = vadd.f32 %v1381_v28, %v1233_v9 }
 0x65c   : > { %v1390_v43 = vadd.f32 %v1376_v40, %v1233_v9 }
 0x65d   : > { %v1404_v47 = vmax.f32 %v1397_v41, %v1399_v39  ;;  %v1402_v15 = vsel %vm501_vm10, %v1391_v38, -inf }
 0x65e   : > { %v1403_v50 = vmax.f32 %v1395_v45, %v1402_v15  ;;  %v1400_v51 = vsel %vm501_vm10, %v1390_v43, -inf  ;;  %v199_v15 = vld [vmem:[#allocation5 + $0xb8] sm:$0xff] }
 0x65f   : > { %v1401_v52 = vmax.f32 %v1394_v44, %v1400_v51 }
 0x661   : > { %v1405_v46 = vmax.f32 %v1401_v52, %v1403_v50 }
 0x663   : > { %v1406_v55 = vmax.f32 %v1404_v47, %v1405_v46  ;;  %v198_v47 = vld [vmem:[#allocation5 + $0xb0] sm:$0xff] }
 0x664   : > { %v1988_v44 = vpack.c.bf16 %v199_v15, %v198_v47 }
 0x666   : > { %1989 = vmatpush3.bf16.msra.mxu0 %v1988_v44 }
 0x6b9   : > { %v1239_v56 = vpop.permute.xlu1 %1238 }
 0x6ba   : > { %v1241_v48 = vadd.f32 %v1239_v56, %v1233_v9 }
 0x6bc   : > { %v1246_v49 = vadd.f32 %v1756_v12, %v1241_v48 }
 0x6be   : > { %v1407_v57 = vmax.f32 %v1406_v55, %v1246_v49 }
 0x6c0   : > { %v1408_v58 = vsub.f32 %v1384_v19, %v1407_v57  ;;  %v1409_v60 = vsub.f32 %v1385_v18, %v1407_v57  ;;  %v1410_v62 = vsub.f32 %v1386_v25, %v1407_v57  ;;  %v1411_v63 = vsub.f32 %v1387_v24, %v1407_v57 }
 0x6c1   : > { %v1412_v0 = vsub.f32 %v1388_v33, %v1407_v57  ;;  %v1413_v1 = vsub.f32 %v1389_v32, %v1407_v57  ;;  %v1414_v2 = vsub.f32 %v1390_v43, %v1407_v57  ;;  %v1415_v4 = vsub.f32 %v1391_v38, %v1407_v57 }
 0x6c2   : > { %v1416_v6 = vmul.f32 1.442695, %v1408_v58  ;;  %v1418_v10 = vmul.f32 1.442695, %v1409_v60  ;;  %v1420_v13 = vmul.f32 1.442695, %v1410_v62  ;;  %v1432_v14 = vsub.f32 %v1246_v49, %v1407_v57 }
 0x6c3   : > { %v1422_v16 = vmul.f32 1.442695, %v1411_v63  ;;  %v1424_v17 = vmul.f32 1.442695, %v1412_v0  ;;  %v1426_v9 = vmul.f32 1.442695, %v1413_v1 }
 0x6c4   : > { %2083 = vpow2.f32 %v1416_v6  ;;  %v1428_v12 = vmul.f32 1.442695, %v1414_v2  ;;  %v1430_v18 = vmul.f32 1.442695, %v1415_v4  ;;  %v1433_v23 = vmul.f32 1.442695, %v1432_v14 }
 0x6c5   : > { %2085 = vpow2.f32 %v1418_v10 }
 0x6c6   : > { %2087 = vpow2.f32 %v1420_v13 }
 0x6c7   : > { %2089 = vpow2.f32 %v1422_v16 }
 0x6c8   : > { %2091 = vpow2.f32 %v1424_v17 }
 0x6c9   : > { %2093 = vpow2.f32 %v1426_v9 }
 0x6ca   : > { %2095 = vpow2.f32 %v1428_v12 }
 0x6cb   : > { %2097 = vpow2.f32 %v1430_v18 }
 0x6cc   : > { %2099 = vpow2.f32 %v1433_v23 }
 0x6ce   : > { %v2084_v19 = vpop.eup %2083 }
 0x6cf   : > { %v2086_v20 = vpop.eup %2085  ;;  %v1435_v21 = vsel %vm501_vm10, %v2084_v19, 0.0  ;;  %1461 = vperm.xlu0 %2058, %v2084_v19  }
 0x6d0   : > { %v2088_v22 = vpop.eup %2087  ;;  %v1436_v24 = vsel %vm501_vm10, %v2086_v20, 0.0  ;;  %1466 = vperm.xlu1 %2059, %v2086_v20  }
 0x6d1   : > { %v2090_v25 = vpop.eup %2089  ;;  %v1437_v26 = vadd.f32 %v1436_v24, %v1435_v21  ;;  %v1438_v27 = vsel %vm501_vm10, %v2088_v22, 0.0 }
 0x6d2   : > { %v2092_v30 = vpop.eup %2091  ;;  %v1440_v32 = vsel %vm501_vm10, %v2090_v25, 0.0 }
 0x6d3   : > { %v1439_v31 = vadd.f32 %v1438_v27, %v1437_v26  ;;  %1471 = vperm.xlu0 %2058, %v2088_v22   ;;  %v2094_v33 = vpop.eup %2093  ;;  %v1442_v11 = vsel %vm501_vm10, %v2092_v30, 0.0 }
 0x6d4   : > { %1476 = vperm.xlu1 %2059, %v2090_v25   ;;  %v2096_v35 = vpop.eup %2095  ;;  %v1444_v37 = vsel %vm501_vm10, %v2094_v33, 0.0  ;;  %v1765_v25 = vld [vmem:[#allocation5 + $0xc0] ss:$0 sm:$0xff] }
 0x6d5   : > { %v1441_v34 = vadd.f32 %v1440_v32, %v1439_v31  ;;  %v2098_v36 = vpop.eup %2097  ;;  %v1446_v29 = vsel %vm501_vm10, %v2096_v35, 0.0 }
 0x6d6   : > { %v1448_v41 = vsel %vm501_vm10, %v2098_v36, 0.0  ;;  %v2100_v43 = vpop.eup %2099 }
 0x6d7   : > { %v1443_v28 = vadd.f32 %v1442_v11, %v1441_v34  ;;  %1481 = vperm.xlu0 %2058, %v2092_v30  }
 0x6d8   : > { %1486 = vperm.xlu1 %2059, %v2094_v33  }
 0x6d9   : > { %v1445_v39 = vadd.f32 %v1444_v37, %v1443_v28 }
 0x6db   : > { %v1447_v40 = vadd.f32 %v1446_v29, %v1445_v39  ;;  %1491 = vperm.xlu0 %2058, %v2096_v35  }
 0x6dc   : > { %1496 = vperm.xlu1 %2059, %v2098_v36  }
 0x6dd   : > { %v1449_v38 = vadd.f32 %v1448_v41, %v1447_v40 }
 0x6df   : > { %v1450_v45 = vadd.f32 %v2100_v43, %v1449_v38  ;;  %1455 = vperm.xlu0 %2058, %v2100_v43  }
 0x6e1   : > { %2101 = vrcp.f32 %v1450_v45 }
 0x6eb   : > { %v2102_v50 = vpop.eup %2101 }
 0x6ec   : > { %1525 = vperm.xlu1 %2059, %v2102_v50  }
 0x74e   : > { %v1462_v51 = vpop.permute.xlu0 %1461 }
 0x74f   : > { %v1467_v52 = vpop.permute.xlu1 %1466  ;;  %v1499_v46 = vmul.f32 %v1462_v51, %v2533_v53 }
 0x750   : > { %v1500_v55 = vmul.f32 %v1467_v52, %v2535_v54 }
 0x751   : > { %v1507_v56 = vsel %vm371_vm3, %v1499_v46, 0.0 }
 0x752   : > { %v1508_v48 = vsel %vm371_vm3, %v1500_v55, 0.0  ;;  %v1472_v49 = vpop.permute.xlu0 %1471 }
 0x753   : > { %v1477_v57 = vpop.permute.xlu1 %1476  ;;  %v1501_v58 = vmul.f32 %v1472_v49, %v2541_v59  ;;  %v1509_v60 = vadd.f32 %v1508_v48, %v1507_v56 }
 0x754   : > { %v1502_v62 = vmul.f32 %v1477_v57, %v2545_v61 }
 0x755   : > { %v1510_v63 = vsel %vm371_vm3, %v1501_v58, 0.0 }
 0x756   : > { %v1511_v0 = vadd.f32 %v1510_v63, %v1509_v60  ;;  %v1482_v1 = vpop.permute.xlu0 %1481  ;;  %v1512_v2 = vsel %vm371_vm3, %v1502_v62, 0.0 }
 0x757   : > { %v1487_v53 = vpop.permute.xlu1 %1486  ;;  %v1503_v54 = vmul.f32 %v1482_v1, %v2549_v3 }
 0x758   : > { %v1513_v4 = vadd.f32 %v1512_v2, %v1511_v0  ;;  %v1504_v6 = vmul.f32 %v1487_v53, %v2553_v5 }
 0x759   : > { %v1514_v10 = vsel %vm371_vm3, %v1503_v54, 0.0 }
 0x75a   : > { %v1515_v13 = vadd.f32 %v1514_v10, %v1513_v4  ;;  %v1492_v14 = vpop.permute.xlu0 %1491  ;;  %v1516_v61 = vsel %vm371_vm3, %v1504_v6, 0.0 }
 0x75b   : > { %v1505_v59 = vmul.f32 %v1492_v14, %v2557_v7  ;;  %v1497_v16 = vpop.permute.xlu1 %1496 }
 0x75c   : > { %v1517_v17 = vadd.f32 %v1516_v61, %v1515_v13  ;;  %v1506_v12 = vmul.f32 %v1497_v16, %v2561_v8 }
 0x75d   : > { %v1518_v9 = vsel %vm371_vm3, %v1505_v59, 0.0 }
 0x75e   : > { %v1519_v3 = vadd.f32 %v1518_v9, %v1517_v17  ;;  %v1456_v18 = vpop.permute.xlu0 %1455  ;;  %v1520_v5 = vsel %vm371_vm3, %v1506_v12, 0.0 }
 0x75f   : > { %v1458_v19 = vmul.f32 %v1456_v18, %v2529_v42 }
 0x760   : > { %v1521_v20 = vadd.f32 %v1520_v5, %v1519_v3 }
 0x762   : > { %v1522_v21 = vadd.f32 %v1521_v20, %v1458_v19 }
 0x76b   : > { %v1526_v22 = vpop.permute.xlu1 %1525 }
 0x76c   : > { %v1528_v7 = vmul.f32 %v1526_v22, %v1522_v21 }
 0x76e   : > { %vm1529_vm9 = vcmp.gt.f32.partialorder %v1528_v7, 0.0  ;;  %v1530_v23 = vmul.f32 0.2, %v1528_v7 }
 0x770   : > { %v1531_v24 = vsel %vm1529_vm9, %v1528_v7, %v1530_v23 }
 0x771   : > { %1952 = vmatmul.mubr.msk.f32.vlgmr.msra.gmra.mrb[22].mxu0 %vm371_vm3, %v1531_v24 }
 0x844   : > { %v1605_v8 = vpop.f32.mrb[22].mxu0 }
 0x845   : > { %v1606_v26 = vadd.f32 %v1765_v25, %v1605_v8  ;;  %v1953_v27 = vpop.f32.mrb[23].mxu0 }
 0x847   : > { %1609 = vst [vmem:[%s175_s24] sm:$0xff] %v1606_v26 }
 0x848   : > { %2174 = shalt.err (!%p2171_p11)
}
 0x849   : > { %s2175_s3 = scalar_lea.hbm %s2605_s17, 128  ;;  %s2179_s6 = scalar_lea.hbm %s2651_s2, 256 }
 0x84a   : > { %p2176_p13 = scmp.ne.s32.totalorder %s2605_s17, %s2175_s3  ;;  %p2180_p12 = scmp.lt.u32.totalorder %s2605_s17, %s2651_s2 }
 0x84b   : > { %p2181_p7 = scmp.lt.u32.totalorder %s2179_s6, %s2175_s3  ;;  %p2183_p8 = scmp.lt.u32.totalorder %s2175_s3, %s2605_s17 }
 0x84c   : > { %p2177_p2 = pnand %p2176_p13, %p2669_p9 }
 0x84d   : > { %p2182_p3 = por %p2181_p7, %p2180_p12 }
 0x84e   : > { %p2178_p6 = pneg %p2177_p2 }
 0x84f   : > { %p2184_p10 = por %p2183_p8, %p2182_p3 }
 0x851   : > { %p2185_p1 = pnand %p2184_p10, %p2178_p6 }
 0x853   : > { %2188 = shalt.err (!%p2185_p1)
}
 0x854   : > { %1998 = dma.vmem_to_hbm [thread:$0]  (%p2669_p9), %s2607_s26, 128, %s2605_s17, %s1611_s29  }
 0x855 PF: > { %s1636_s20 = sand.u32 1, %s2219_s9   ;;  %p2670_p4 = scmp.ne.s32.totalorder %s2659_s22, 0 }
 0x856   : > { %p2671_p0 = scmp.ge.s32.totalorder %s2231_s12, 2  ;;  %s1637_s23 = scalar_lea.sflag [#allocation4], %s1636_s20 }
 0x858   : > { %p2009_p5 = pnand %p2671_p0, %p2670_p4 }
 0x85a   : > { %2214 = dma.done.wait (!%p2009_p5), %s1637_s23, 128  }
 0x85b   : > { %2216 = vsyncadd (!%p2009_p5), %s1637_s23, 4294967168  ;;  %p16_p11 = scmp.ge.s32.totalorder %s2285_s15, 4   ;;  %s2672_s9 = smov %s2223_s10 }
 0x85c   : > { %s2673_s10 = smov %s2227_s11  ;;  %s2674_s11 = smov %s2297_s18 }
 0x85d   : > { %s2675_s12 = smov %s2285_s15  ;;  %18 = sbr.rel (!%p16_p11) target bundleno = 6 (0x6), region = 77 }
 0x864   :  { %1642 = vsyncpa [#allocation3], 1 }
 0x865   :  { %1644 = vsyncpa [#allocation3 + $0x1], 1 }
 0x866   :  { %1645 = vsyncpa [#allocation6], 1 }
 0x867   :  { %1646 = vsyncpa [#allocation4], 1 }
 0x868   :  { %1648 = vsyncpa [#allocation4 + $0x1], 1 }

</bundles_post_ra>
